<compile_context>
chip_gen: v7x
topology: tpu7x:2x2x1
jax: 0.10.0
libtpu: 0.0.40
codegen_flags: <defaults>
</compile_context>

<pallas_src>
import functools

import jax
import jax.numpy as jnp
from jax.experimental import pallas as pl
from jax.experimental.pallas import tpu as pltpu


def _round_up(x, m):
    return ((x + m - 1) // m) * m


def _pick_tile(total, max_tile, quantum):
    """Largest multiple of `quantum` that divides `total` and is <= max_tile."""
    best = quantum
    t = quantum
    limit = min(total, max_tile)
    while t <= limit:
        if total % t == 0:
            best = t
        t += quantum
    return best


def _fused_heads_kernel(z_ref, w_ref, b_ref, out_ref):
    # z_ref: (tb, H) bf16; w_ref: (H, tn) bf16; b_ref: (1, tn) f32.
    acc = jnp.dot(z_ref[...], w_ref[...], preferred_element_type=jnp.float32)
    out_ref[...] = (acc + b_ref[...]).astype(out_ref.dtype)


def prepare_fused_params(w_cont, b_cont, w_cat, b_cat):
    """One-time parameter prep (hoisted out of the per-call forward).

    Pads each head independently to a 128-lane boundary, concatenates into a
    single fused weight/bias, and casts W to bf16 (native MXU input) and the
    bias to f32 (accumulator dtype).  Weights are in [H, N_out] layout
    (transpose of torch's [N_out, H])."""
    H, n_con = w_cont.shape
    n_cat = w_cat.shape[1]
    n_con_pad = _round_up(n_con, 128)
    n_cat_pad = _round_up(n_cat, 128)

    w_fused = jnp.concatenate(
        [jnp.pad(w_cont, ((0, 0), (0, n_con_pad - n_con))),
         jnp.pad(w_cat, ((0, 0), (0, n_cat_pad - n_cat)))],
        axis=1).astype(jnp.bfloat16)
    b_fused = jnp.concatenate(
        [jnp.pad(b_cont.reshape(1, -1), ((0, 0), (0, n_con_pad - n_con))),
         jnp.pad(b_cat.reshape(1, -1), ((0, 0), (0, n_cat_pad - n_cat)))],
        axis=1).astype(jnp.float32)

    meta = dict(n_con=n_con, n_cat=n_cat, n_con_pad=n_con_pad,
                n_cat_pad=n_cat_pad)
    return (w_fused, b_fused), meta


@functools.partial(
    jax.jit,
    static_argnames=("n_con", "n_cat", "n_con_pad", "block_b", "block_n",
                     "out_dtype"),
)
def mlp_embedding_r_forward(z, w_fused, b_fused, *, n_con, n_cat, n_con_pad,
                            block_b=512, block_n=512,
                            out_dtype=jnp.bfloat16):
    """z: [B, H]; w_fused/b_fused from prepare_fused_params.
    Returns (x_cont_recon [B, n_con], x_cat_recon [B, n_cat]) in out_dtype."""
    B, H = z.shape
    n_pad = w_fused.shape[1]

    # ---- batch tiling: multiple of 8 sublanes; >= 2 grid steps when possible
    tb = _round_up(min(block_b, B), 8)
    if B > 8 and _round_up(B, tb) // tb < 2:
        tb = _round_up((B + 1) // 2, 8)          # v7x: feed both TensorCores
    b_padded = _round_up(B, tb)

    # ---- output-column tiling: multiple of 128 lanes, divides n_pad
    tn = _pick_tile(n_pad, block_n, 128)

    z_p = z.astype(jnp.bfloat16)
    if b_padded != B:
        z_p = jnp.pad(z_p, ((0, b_padded - B), (0, 0)))

    # Batch is the inner grid axis so each (H, tn) weight tile streams once
    # and is reused across every batch tile.
    grid = (n_pad // tn, b_padded // tb)

    out_itemsize = jnp.dtype(out_dtype).itemsize
    vmem_bytes = (2 * tb * H * 2            # z tile   (bf16, double-buffered)
                  + 2 * H * tn * 2          # W tile   (bf16, double-buffered)
                  + 2 * tn * 4              # bias tile (f32)
                  + 2 * tb * tn * out_itemsize)
    vmem_limit = int(min(max(2 * vmem_bytes, 16 * 1024 * 1024),
                         64 * 1024 * 1024))

    out = pl.pallas_call(
        _fused_heads_kernel,
        out_shape=jax.ShapeDtypeStruct((b_padded, n_pad), out_dtype),
        grid=grid,
        in_specs=[
            pl.BlockSpec((tb, H), lambda j, i: (i, 0)),   # z: batch-tiled
            pl.BlockSpec((H, tn), lambda j, i: (0, j)),   # fused W column tile
            pl.BlockSpec((1, tn), lambda j, i: (0, j)),   # fused bias tile
        ],
        out_specs=pl.BlockSpec((tb, tn), lambda j, i: (i, j)),
        compiler_params=pltpu.CompilerParams(
            dimension_semantics=("parallel", "parallel"),
            vmem_limit_bytes=vmem_limit,
        ),
    )(z_p, w_fused, b_fused)

    out = out[:B]
    x_cont = out[:, :n_con]                           # head 0 slab starts at 0
    x_cat = out[:, n_con_pad:n_con_pad + n_cat]       # head 1 slab lane-aligned
    return x_cont, x_cat


def init_params(key, hidden_size, num_con, cat_lengths):
    """Mirrors MLP_Embedding_R._init_weights: head weights are normal
    (std=0.01 cont, std=0.1 cat, overriding the earlier xavier init); biases
    are zero.  Stored in [H, N_out] layout (transpose of torch's [N_out, H])."""
    sum_cat = int(sum(cat_lengths))
    k1, k2 = jax.random.split(key, 2)
    w_cont = 0.01 * jax.random.normal(k1, (hidden_size, num_con), jnp.float32)
    w_cat = 0.1 * jax.random.normal(k2, (hidden_size, sum_cat), jnp.float32)
    b_cont = jnp.zeros((1, num_con), jnp.float32)
    b_cat = jnp.zeros((1, sum_cat), jnp.float32)
    return w_cont, b_cont, w_cat, b_cat


if __name__ == "__main__":
    # field lengths: 1 -> continuous feature, >1 -> categorical vocab size.
    # TODO(synk): field_lengths_tabular is torch.load'ed from disk in the
    # PyTorch module; replaced with an in-script deterministic list.
    field_lengths = [1, 3, 1, 5, 7, 1, 1]            # 4 continuous, cats [3,5,7]
    cat_lengths = [x for x in field_lengths if x > 1]
    num_con = sum(1 for x in field_lengths if x == 1)
    hidden_size = 32
    batch = 8

    key = jax.random.PRNGKey(0)
    k_z, k_p = jax.random.split(key)
    z = jax.random.normal(k_z, (batch, hidden_size), jnp.float32)
    w_cont, b_cont, w_cat, b_cat = init_params(k_p, hidden_size, num_con,
                                               cat_lengths)

    # One-time fused / padded / bf16 parameter prep (NOT in the per-call path).
    (w_fused, b_fused), meta = prepare_fused_params(w_cont, b_cont, w_cat,
                                                    b_cat)
    fwd = functools.partial(mlp_embedding_r_forward,
                            n_con=meta["n_con"], n_cat=meta["n_cat"],
                            n_con_pad=meta["n_con_pad"])

    # Default path: bf16 output (halves the dominant writeback stream).
    x_cont_recon, x_cat_recon = fwd(z, w_fused, b_fused)
    # Full-precision output path for tight numerics checks.
    x_cont_f32, x_cat_f32 = fwd(z, w_fused, b_fused, out_dtype=jnp.float32)
    jax.block_until_ready((x_cont_recon, x_cat_recon, x_cont_f32, x_cat_f32))

    assert x_cont_recon.shape == (batch, num_con)
    assert x_cat_recon.shape == (batch, sum(cat_lengths))

    # Reference matching the bf16-input / f32-accumulate kernel path.
    z_bf = z.astype(jnp.bfloat16)
    ref_cont = jnp.dot(z_bf, w_cont.astype(jnp.bfloat16),
                       preferred_element_type=jnp.float32) + b_cont
    ref_cat = jnp.dot(z_bf, w_cat.astype(jnp.bfloat16),
                      preferred_element_type=jnp.float32) + b_cat
    assert jnp.allclose(x_cont_f32, ref_cont, atol=1e-4, rtol=1e-4)
    assert jnp.allclose(x_cat_f32, ref_cat, atol=1e-4, rtol=1e-4)

    # bf16-output path: loose check against the full-f32 reference
    # (bf16 input + output rounding only).
    assert jnp.allclose(x_cont_recon.astype(jnp.float32),
                        z @ w_cont + b_cont, atol=5e-2, rtol=5e-2)
    assert jnp.allclose(x_cat_recon.astype(jnp.float32),
                        z @ w_cat + b_cat, atol=5e-2, rtol=5e-2)

    print("KERNEL_OK")
</pallas_src>

<mosaic_0001>
module attributes {stable_mosaic.version = 11 : i64} {
  func.func @_fused_heads_kernel(%arg0: i32, %arg1: i32, %arg2: memref<8x32xbf16, #tpu.memory_space<vmem>>, %arg3: memref<32x256xbf16, #tpu.memory_space<vmem>>, %arg4: memref<1x256xf32, #tpu.memory_space<vmem>>, %arg5: memref<8x256xbf16, #tpu.memory_space<vmem>>) attributes {dimension_semantics = [#tpu.dimension_semantics<parallel>, #tpu.dimension_semantics<parallel>], iteration_bounds = array<i64: 1, 1>, scalar_prefetch = 0 : i64, scratch_operands = 0 : i64, tpu.core_type = #tpu.core_type<tc>, window_params = [{transform_indices = @transform_0, window_bounds = array<i64: 8, 32>}, {transform_indices = @transform_1, window_bounds = array<i64: 32, 256>}, {transform_indices = @transform_2, window_bounds = array<i64: 1, 256>}, {transform_indices = @transform_3, window_bounds = array<i64: 8, 256>}]} {
    %c0 = arith.constant 0 : index
    %c0_0 = arith.constant 0 : index
    %0 = vector.load %arg2[%c0, %c0_0] : memref<8x32xbf16, #tpu.memory_space<vmem>>, vector<8x32xbf16>
    %c0_1 = arith.constant 0 : index
    %c0_2 = arith.constant 0 : index
    %1 = vector.load %arg3[%c0_1, %c0_2] : memref<32x256xbf16, #tpu.memory_space<vmem>>, vector<32x256xbf16>
    %cst = arith.constant dense<0.000000e+00> : vector<8x256xf32>
    %2 = tpu.matmul %0, %1, %cst {dimension_numbers = #tpu.dot_dimension_numbers<[1], [0], [0], [1], [0, 0, 1, 1], [], []>} : vector<8x32xbf16>, vector<32x256xbf16>, vector<8x256xf32> -> vector<8x256xf32>
    %c0_3 = arith.constant 0 : index
    %c0_4 = arith.constant 0 : index
    %3 = vector.load %arg4[%c0_3, %c0_4] : memref<1x256xf32, #tpu.memory_space<vmem>>, vector<1x256xf32>
    %4 = vector.broadcast %3 : vector<1x256xf32> to vector<8x256xf32>
    %5 = arith.addf %2, %4 : vector<8x256xf32>
    %6 = arith.truncf %5 : vector<8x256xf32> to vector<8x256xbf16>
    %c0_5 = arith.constant 0 : index
    %c0_6 = arith.constant 0 : index
    %7 = vector.load %arg5[%c0_5, %c0_6] : memref<8x256xbf16, #tpu.memory_space<vmem>>, vector<8x256xbf16>
    tpu.vector_store %arg5[%c0_5, %c0_6], %6 {strides = array<i32>} : memref<8x256xbf16, #tpu.memory_space<vmem>>, vector<8x256xbf16>,
    return
  }
  func.func @transform_0(%arg0: i32, %arg1: i32) -> (i32, i32) {
    %c0_i32 = arith.constant 0 : i32
    %c0_i32_0 = arith.constant 0 : i32
    return %arg1, %c0_i32 : i32, i32
  }
  func.func @transform_1(%arg0: i32, %arg1: i32) -> (i32, i32) {
    %c0_i32 = arith.constant 0 : i32
    %c0_i32_0 = arith.constant 0 : i32
    return %c0_i32, %arg0 : i32, i32
  }
  func.func @transform_2(%arg0: i32, %arg1: i32) -> (i32, i32) {
    %c0_i32 = arith.constant 0 : i32
    %c0_i32_0 = arith.constant 0 : i32
    return %c0_i32, %arg0 : i32, i32
  }
  func.func @transform_3(%arg0: i32, %arg1: i32) -> (i32, i32) {
    %c0_i32 = arith.constant 0 : i32
    return %arg1, %arg0 : i32, i32
  }
}

</mosaic_0001>

<bundles_post_ra>
// kernel: mlp_embedding_r_forward.1
= control target key start
LH: loop header
LB: loop body
LE: loop exit
PB: predicated region body
PF: predicated region fallthrough
CT: control target
= control target key end

     0   :  { %8 = vsyncpa [#allocation3], 0  ;;  %s166_s12 = smov [#allocation2]   ;;  %s211_s0 = inlined_call_operand.vmem [shape: bf16[8,32], index: 0, kind: input, shape index: {}]   ;;  %s212_s1 = inlined_call_operand.hbm [shape: bf16[32,256], index: 1, kind: input, shape index: {}]   ;;  %s213_s2 = inlined_call_operand.vmem [shape: f32[1,256], index: 2, kind: input, shape index: {}]   ;;  %s214_s3 = inlined_call_operand.vmem [shape: bf16[8,256], index: 3, kind: output, shape index: {}]  }
   0x1   :  { %s16_s13 = sshll.u32 %s166_s12, 4  ;;  %s142_s16 = scalar_lea.hbm %s212_s1, 512  ;;  %s17_s13 = int_to_ptr.vmem [resolvable:$true] %s16_s13 }
   0x2   :  { %p143_p0 = scmp.ne.s32.totalorder %s212_s1, %s142_s16  ;;  %p146_p1 = scmp.lt.u32.totalorder %s142_s16, %s212_s1 }
   0x4   :  { %p148_p2 = pnand %p146_p1, %p143_p0 }
   0x6   :  { %151 = shalt.err (!%p148_p2)
}
   0x7   :  { %s152_s21 = scalar_lea.vmem %s17_s13, 512  ;;  %p157_p4 = scmp.lt.s32.totalorder %s17_s13, %s17_s13 }
   0x8   :  { %p153_p3 = scmp.ne.s32.totalorder %s17_s13, %s152_s21  ;;  %p158_p5 = scmp.lt.s32.totalorder %s152_s21, %s152_s21 }
   0xa   :  { %p159_p6 = por %p158_p5, %p157_p4 }
   0xc   :  { %p160_p7 = pnand %p159_p6, %p153_p3 }
   0xe   :  { %163 = shalt.err (!%p160_p7)
}
   0xf   :  { %s167_s22 = smov 128   ;;  %s168_s23 = smov 8  }
  0x10   :  { %22 = dma.hbm_to_vmem [thread:$0]  %s212_s1, 512, %s17_s13, [#allocation3], %s167_s22, %s167_s22, %s168_s23  }
  0x11   :  { %164 = dma.done.wait [#allocation3], 512  }
  0x12   :  { %165 = vsyncadd [#allocation3], 4294966784  ;;  %v169_v0 = vmov 0   ;;  %v136_v1 = vld [vmem:[#allocation2 + $0x4] ss:$8 sps:$4 sm:$0xff]   ;;  %vm66_vm0 = vcmask 261120   ;;  %v36_v6 = vlaneseq }
  0x13   :  { %102 = vmatprep.mubr.bf16.mxu0 %v169_v0  ;;  %v138_v2 = vld [vmem:[#allocation2] ss:$8 sps:$4 sm:$0xff]   ;;  %70 = vmatprep.subr.bf16.mxu0 %v136_v1  ;;  %v139_v3 = vld [vmem:[#allocation2 + $0x14] ss:$8 sps:$4 sm:$0xff]   ;;  %v141_v4 = vld [vmem:[#allocation2 + $0x10] ss:$8 sps:$4 sm:$0xff]  }
  0x14   :  { %71 = vmatpush1.bf16.msra.mxu0 %v138_v2  ;;  %v29_v5 = vld [vmem:[%s211_s0] sm:$0xf]  ;;  %v37_v7 = vshrl.u32 %v36_v6, 7 }
  0x15   :  { %72 = vmatprep.subr.bf16.mxu0 %v139_v3  ;;  %v34_v9 = vld [vmem:[%s213_s2] sm:$0x3] }
  0x16   :  { %v38_v8 = vsub.s32 0, %v37_v7  ;;  %v42_v10 = vsub.s32 1, %v37_v7 }
  0x18   :  { %73 = vmatpush1.bf16.msra.mxu0 %v141_v4  ;;  %v39_v11 = vrot.slane %v34_v9, %v38_v8  ;;  %v43_v12 = vrot.slane %v34_v9, %v42_v10 }
  0x1b   :  { %129 = vmatmul.mubr.msk.bf16.vlgmr.msra.gmra.mrb[0].mxu0 %vm66_vm0, %v29_v5 }
  0xee   :  { %v104_v13 = vpop.f32.mrb[0].mxu0 }
  0xef   :  { %v105_v14 = vadd.f32 %v104_v13, %v39_v11  ;;  %v106_v15 = vpop.f32.mrb[1].mxu0 }
  0xf0   :  { %v107_v16 = vadd.f32 %v106_v15, %v43_v12  ;;  %v108_v17 = vpop.f32.mrb[2].mxu0 }
  0xf1   :  { %v109_v18 = vpop.f32.mrb[3].mxu0 }
  0xf2   :  { %v131_v19 = vpack.c.bf16 %v107_v16, %v105_v14 }
  0xf4   :  { %119 = vst [vmem:[%s214_s3] sm:$0xff] %v131_v19 }
  0xf5   :  { %124 = vsyncpa [#allocation3], 1 }

</bundles_post_ra>
